<compile_context>
chip_gen: v7x
topology: tpu7x:2x2x1
jax: 0.10.0
libtpu: 0.0.40
codegen_flags: <defaults>
</compile_context>

<pallas_src>
import jax
import jax.numpy as jnp
from jax import lax
from jax.experimental import pallas as pl
from jax.experimental.pallas import tpu as pltpu

# Opt-in bf16 compute (biggest throughput lever on v6e: 918 TF/s bf16 MXU).
# Off by default to preserve the reference module's f32 numerics.
_COMPUTE_IN_BF16 = False


def _dot_nt(a, b):
    """(tm, tk) x (tn, tk) -> (tm, tn): contract last dims => x @ W^T per tile.

    The weight stays in PyTorch (N, K) layout; the transposed contraction is
    expressed via dot_general dimension_numbers and lowered onto the MXU
    (no per-tile XLU transpose, no HBM relayout of the constant weight).
    """
    if _COMPUTE_IN_BF16:
        a = a.astype(jnp.bfloat16)
        b = b.astype(jnp.bfloat16)
    return lax.dot_general(
        a, b,
        dimension_numbers=(((1,), (1,)), ((), ())),
        preferred_element_type=jnp.float32,
    )


# ---------- fast path: full K in one grid step, no accumulator --------------

def _fast_kernel_bias(x_ref, w_ref, b_ref, o_ref):
    acc = _dot_nt(x_ref[...], w_ref[...])
    o_ref[...] = (acc + b_ref[...].astype(jnp.float32)).astype(o_ref.dtype)


def _fast_kernel_nobias(x_ref, w_ref, o_ref):
    o_ref[...] = _dot_nt(x_ref[...], w_ref[...]).astype(o_ref.dtype)


# ---------- K-tiled path: accumulate into the resident output block ---------
# The output index_map ignores k, so its block stays in VMEM across the whole
# reduction: accumulate straight into o_ref (f32 outputs), saving the scratch
# buffer and the epilogue full-tile copy.

def _ktiled_kernel_bias(x_ref, w_ref, b_ref, o_ref):
    k = pl.program_id(2)

    @pl.when(k == 0)
    def _():
        o_ref[...] = jnp.broadcast_to(b_ref[...].astype(o_ref.dtype),
                                      o_ref.shape)

    o_ref[...] += _dot_nt(x_ref[...], w_ref[...]).astype(o_ref.dtype)


def _ktiled_kernel_nobias(x_ref, w_ref, o_ref):
    k = pl.program_id(2)

    @pl.when(k == 0)
    def _():
        o_ref[...] = jnp.zeros_like(o_ref)

    o_ref[...] += _dot_nt(x_ref[...], w_ref[...]).astype(o_ref.dtype)


# Scratch-accumulator variants, used only when the output dtype is narrower
# than f32 (keeps full-precision accumulation).

def _ktiled_kernel_bias_scratch(x_ref, w_ref, b_ref, o_ref, acc_ref):
    k = pl.program_id(2)

    @pl.when(k == 0)
    def _():
        acc_ref[...] = jnp.zeros_like(acc_ref)

    acc_ref[...] += _dot_nt(x_ref[...], w_ref[...])

    @pl.when(k == pl.num_programs(2) - 1)
    def _():
        o_ref[...] = (acc_ref[...] + b_ref[...].astype(jnp.float32)).astype(
            o_ref.dtype)


def _ktiled_kernel_nobias_scratch(x_ref, w_ref, o_ref, acc_ref):
    k = pl.program_id(2)

    @pl.when(k == 0)
    def _():
        acc_ref[...] = jnp.zeros_like(acc_ref)

    acc_ref[...] += _dot_nt(x_ref[...], w_ref[...])

    @pl.when(k == pl.num_programs(2) - 1)
    def _():
        o_ref[...] = acc_ref[...].astype(o_ref.dtype)


# ---------- generation / tiling helpers --------------------------------------

def _tpu_generation():
    try:
        kind = jax.devices()[0].device_kind.lower()
    except Exception:
        return "unknown"
    if "v5 lite" in kind or "v5e" in kind or "v5litepod" in kind:
        return "v5e"
    if "v6" in kind:
        return "v6e"
    if "v7" in kind:
        return "v7x"
    return "unknown"


# Per-generation knobs: explicit scoped-VMEM limit + tile caps.
#   v5e/v6e: 128 MiB physical VMEM -> ~100 MiB limit; v6e gets bigger K-tiles
#            (fewer grid steps, fewer HBM re-reads).
#   v7x:     64 MiB physical VMEM  -> ~48 MiB limit; keep modest tiles and
#            make sure the parallel grid covers both TensorCores.
_GEN_KNOBS = {
    "v5e":     dict(vmem=100 << 20, tm=256, tn=512,  tk=1024, two_core=False),
    "v6e":     dict(vmem=100 << 20, tm=512, tn=1024, tk=2048, two_core=False),
    "v7x":     dict(vmem=48 << 20,  tm=256, tn=512,  tk=1024, two_core=True),
    "unknown": dict(vmem=48 << 20,  tm=256, tn=512,  tk=1024, two_core=True),
}


def _sublane_granule(dtype):
    return {4: 8, 2: 16, 1: 32}.get(jnp.dtype(dtype).itemsize, 8)


def _pick_tile(dim, cap, granule):
    """Largest granule-multiple tile <= cap.

    dim <= cap -> full dim (always layout-legal).  Otherwise prefer an exact
    divisor (no ragged edge); if none exists, return the granule-aligned cap
    and rely on a cdiv grid with a masked edge block (never a full-dimension
    fallback that could blow VMEM).
    """
    if dim <= cap:
        return dim
    t = (cap // granule) * granule
    while t >= granule:
        if dim % t == 0:
            return t
        t -= granule
    return max(granule, (cap // granule) * granule)


def _split_for_two_cores(M, N, tm, tn, sub_m):
    """v7x has 2 TensorCores: ensure the parallel grid has >= 2 blocks."""
    if pl.cdiv(M, tm) * pl.cdiv(N, tn) >= 2:
        return tm, tn
    if N >= 2 * 128:
        tn = max(128, ((N // 2) // 128) * 128)
    elif M >= 2 * sub_m:
        tm = max(sub_m, ((M // 2) // sub_m) * sub_m)
    return tm, tn


# ---------- public entry point -----------------------------------------------

@jax.jit
def ld_linear_forward(x, weight, bias=None):
    """Pallas implementation of LDLinear.forward.

    x:      (M, K)  input (batch, in_features)
    weight: (N, K)  PyTorch nn.Linear convention (out_features, in_features)
    bias:   (N,) or None
    returns (M, N)
    """
    M, K = x.shape
    N, K2 = weight.shape
    assert K == K2, "weight must be (out_features, in_features)"

    knobs = _GEN_KNOBS[_tpu_generation()]
    vmem_limit = knobs["vmem"]
    elem = jnp.dtype(x.dtype).itemsize
    sub = _sublane_granule(x.dtype)

    # tn is a lane dim of the output AND a sublane dim of the weight tile;
    # 128 is a multiple of every sublane granule, so a 128 granule covers both.
    tm = _pick_tile(M, knobs["tm"], sub)
    tn = _pick_tile(N, knobs["tn"], 128)
    if knobs["two_core"]:
        tm, tn = _split_for_two_cores(M, N, tm, tn, sub)

    has_bias = bias is not None
    if has_bias:
        b2 = bias.reshape(1, N)

    cost = pl.CostEstimate(
        flops=2 * M * N * K,
        transcendentals=0,
        bytes_accessed=(M * K + N * K + M * N + (N if has_bias else 0)) * elem,
    )

    # Fast-path working set: double-buffered full-K input tiles + output tile
    # (+ bias).  Gate against the explicit VMEM limit handed to the compiler.
    full_k_bytes = (2 * (tm * K + tn * K) * elem + 2 * tm * tn * elem
                    + (2 * N * elem if has_bias else 0))
    use_single_step = full_k_bytes <= int(0.6 * vmem_limit)

    if use_single_step:
        gi, gj = pl.cdiv(M, tm), pl.cdiv(N, tn)
        # Grid-axis order: with i outer the weight is re-streamed gi times;
        # with j outer, x is re-streamed gj times.  Pick the cheaper order.
        if (gi - 1) * N * K <= (gj - 1) * M * K:
            grid = (gi, gj)
            xm = lambda i, j: (i, 0)
            wm = lambda i, j: (j, 0)
            bm = lambda i, j: (0, j)
            om = lambda i, j: (i, j)
        else:
            grid = (gj, gi)
            xm = lambda j, i: (i, 0)
            wm = lambda j, i: (j, 0)
            bm = lambda j, i: (0, j)
            om = lambda j, i: (i, j)

        in_specs = [pl.BlockSpec((tm, K), xm),
                    pl.BlockSpec((tn, K), wm)]
        args = [x, weight]
        if has_bias:
            in_specs.append(pl.BlockSpec((1, tn), bm))
            args.append(b2)
        kernel = _fast_kernel_bias if has_bias else _fast_kernel_nobias

        return pl.pallas_call(
            kernel,
            out_shape=jax.ShapeDtypeStruct((M, N), x.dtype),
            grid_spec=pltpu.PrefetchScalarGridSpec(
                num_scalar_prefetch=0,
                grid=grid,
                in_specs=in_specs,
                out_specs=pl.BlockSpec((tm, tn), om),
            ),
            compiler_params=pltpu.CompilerParams(
                dimension_semantics=("parallel", "parallel"),
                vmem_limit_bytes=vmem_limit,
            ),
            cost_estimate=cost,
        )(*args)

    # ---- general K-tiled path (reduction axis innermost, 'arbitrary') ------
    tk = _pick_tile(K, knobs["tk"], 128)
    if K % tk != 0:
        # No aligned divisor of K: pad the contraction dim once with zeros
        # (zeros contribute nothing) so every K-block is exact.  A ragged
        # K-edge would otherwise feed garbage into real outputs.
        kp = pl.cdiv(K, tk) * tk
        x = jnp.pad(x, ((0, 0), (0, kp - K)))
        weight = jnp.pad(weight, ((0, 0), (0, kp - K)))
        K = kp

    grid = (pl.cdiv(M, tm), pl.cdiv(N, tn), K // tk)

    # NOTE(v7x sweep candidate): pipeline_mode=pl.Buffered(3) on the x / W
    # specs may hide DMA exposure with 2 TCs sharing HBM; measure before use.
    in_specs = [pl.BlockSpec((tm, tk), lambda i, j, k: (i, k)),
                pl.BlockSpec((tn, tk), lambda i, j, k: (j, k))]
    args = [x, weight]
    if has_bias:
        in_specs.append(pl.BlockSpec((1, tn), lambda i, j, k: (0, j)))
        args.append(b2)

    accumulate_in_out = x.dtype == jnp.float32
    if accumulate_in_out:
        kernel = _ktiled_kernel_bias if has_bias else _ktiled_kernel_nobias
        scratch = []
    else:
        kernel = (_ktiled_kernel_bias_scratch if has_bias
                  else _ktiled_kernel_nobias_scratch)
        scratch = [pltpu.VMEM((tm, tn), jnp.float32)]

    return pl.pallas_call(
        kernel,
        out_shape=jax.ShapeDtypeStruct((M, N), x.dtype),
        grid_spec=pltpu.PrefetchScalarGridSpec(
            num_scalar_prefetch=0,
            grid=grid,
            in_specs=in_specs,
            out_specs=pl.BlockSpec((tm, tn), lambda i, j, k: (i, j)),
            scratch_shapes=scratch,
        ),
        compiler_params=pltpu.CompilerParams(
            dimension_semantics=("parallel", "parallel", "arbitrary"),
            vmem_limit_bytes=vmem_limit,
        ),
        cost_estimate=cost,
    )(*args)


if __name__ == "__main__":
    # Small shapes consistent with LDLinear: batch=8, in_features=256, out=128.
    batch, in_features, out_features = 8, 256, 128

    # Deterministic parameter init exactly as LDLinear.__init__:
    #   weight = ones((out, in)) * 0.5 ; bias = ones(out) * 0.5
    weight = jnp.ones((out_features, in_features), dtype=jnp.float32) * 0.5
    bias = jnp.ones((out_features,), dtype=jnp.float32) * 0.5

    key = jax.random.PRNGKey(0)
    x = jax.random.normal(key, (batch, in_features), dtype=jnp.float32)

    out = jax.block_until_ready(ld_linear_forward(x, weight, bias))
    ref = x @ weight.T + bias
    assert out.shape == (batch, out_features)
    assert jnp.allclose(out, ref, atol=1e-4, rtol=1e-4), "mismatch vs reference"

    # Also exercise the bias=None path of the module spec.
    out_nb = jax.block_until_ready(ld_linear_forward(x, weight, None))
    assert jnp.allclose(out_nb, x @ weight.T, atol=1e-4, rtol=1e-4)

    # TODO(synk): backward pass (_naive_linear.backward) and any torch.distributed
    # plumbing are out of scope; only the forward is implemented here.

    print("KERNEL_OK")
</pallas_src>

<mosaic_0001>
module attributes {stable_mosaic.version = 11 : i64} {
  func.func @_fast_kernel_bias(%arg0: i32, %arg1: i32, %arg2: memref<8x256xf32, #tpu.memory_space<vmem>>, %arg3: memref<128x256xf32, #tpu.memory_space<vmem>>, %arg4: memref<1x128xf32, #tpu.memory_space<vmem>>, %arg5: memref<8x128xf32, #tpu.memory_space<vmem>>) attributes {dimension_semantics = [#tpu.dimension_semantics<parallel>, #tpu.dimension_semantics<parallel>], iteration_bounds = array<i64: 1, 1>, scalar_prefetch = 0 : i64, scratch_operands = 0 : i64, tpu.core_type = #tpu.core_type<tc>, window_params = [{transform_indices = @transform_0, window_bounds = array<i64: 8, 256>}, {transform_indices = @transform_1, window_bounds = array<i64: 128, 256>}, {transform_indices = @transform_2, window_bounds = array<i64: 1, 128>}, {transform_indices = @transform_3, window_bounds = array<i64: 8, 128>}]} {
    %c0 = arith.constant 0 : index
    %c0_0 = arith.constant 0 : index
    %0 = vector.load %arg2[%c0, %c0_0] : memref<8x256xf32, #tpu.memory_space<vmem>>, vector<8x256xf32>
    %c0_1 = arith.constant 0 : index
    %c0_2 = arith.constant 0 : index
    %1 = vector.load %arg3[%c0_1, %c0_2] : memref<128x256xf32, #tpu.memory_space<vmem>>, vector<128x256xf32>
    %cst = arith.constant dense<0.000000e+00> : vector<8x128xf32>
    %2 = tpu.matmul %0, %1, %cst {dimension_numbers = #tpu.dot_dimension_numbers<[1], [1], [0], [0], [0, 0, 1, 0], [], []>} : vector<8x256xf32>, vector<128x256xf32>, vector<8x128xf32> -> vector<8x128xf32>
    %c0_3 = arith.constant 0 : index
    %c0_4 = arith.constant 0 : index
    %3 = vector.load %arg4[%c0_3, %c0_4] : memref<1x128xf32, #tpu.memory_space<vmem>>, vector<1x128xf32>
    %4 = vector.broadcast %3 : vector<1x128xf32> to vector<8x128xf32>
    %5 = arith.addf %2, %4 : vector<8x128xf32>
    %c0_5 = arith.constant 0 : index
    %c0_6 = arith.constant 0 : index
    %6 = vector.load %arg5[%c0_5, %c0_6] : memref<8x128xf32, #tpu.memory_space<vmem>>, vector<8x128xf32>
    tpu.vector_store %arg5[%c0_5, %c0_6], %5 {strides = array<i32>} : memref<8x128xf32, #tpu.memory_space<vmem>>, vector<8x128xf32>,
    return
  }
  func.func @transform_0(%arg0: i32, %arg1: i32) -> (i32, i32) {
    %c0_i32 = arith.constant 0 : i32
    %c0_i32_0 = arith.constant 0 : i32
    return %arg0, %c0_i32 : i32, i32
  }
  func.func @transform_1(%arg0: i32, %arg1: i32) -> (i32, i32) {
    %c0_i32 = arith.constant 0 : i32
    %c0_i32_0 = arith.constant 0 : i32
    return %arg1, %c0_i32 : i32, i32
  }
  func.func @transform_2(%arg0: i32, %arg1: i32) -> (i32, i32) {
    %c0_i32 = arith.constant 0 : i32
    %c0_i32_0 = arith.constant 0 : i32
    return %c0_i32, %arg1 : i32, i32
  }
  func.func @transform_3(%arg0: i32, %arg1: i32) -> (i32, i32) {
    %c0_i32 = arith.constant 0 : i32
    return %arg0, %arg1 : i32, i32
  }
}

</mosaic_0001>

<bundles_post_ra>
// kernel: ld_linear_forward.1
= control target key start
LH: loop header
LB: loop body
LE: loop exit
PB: predicated region body
PF: predicated region fallthrough
CT: control target
= control target key end

     0   :  { %8 = vsyncpa [#allocation3], 0  ;;  %s350_s0 = inlined_call_operand.hbm [shape: f32[8,256], index: 0, kind: input, shape index: {}]   ;;  %s351_s1 = inlined_call_operand.hbm [shape: f32[128,256], index: 1, kind: input, shape index: {}]   ;;  %s352_s2 = inlined_call_operand.vmem [shape: f32[1,128], index: 2, kind: input, shape index: {}]   ;;  %s353_s3 = inlined_call_operand.hbm [shape: f32[8,128], index: 3, kind: output, shape index: {}]  }
   0x1   :  { %9 = vsyncpa [#allocation6], 0 }
   0x2   :  { %10 = vsyncpa [#allocation4], 0  ;;  %s279_s12 = smov [#allocation2]   ;;  %s280_s14 = smov [#allocation5]  }
   0x3   :  { %s17_s13 = sshll.u32 %s279_s12, 4  ;;  %s26_s15 = sshll.u32 %s280_s14, 4  ;;  %s18_s13 = int_to_ptr.vmem [resolvable:$true] %s17_s13  ;;  %s304_s15 = int_to_ptr.vmem [resolvable:$true] %s26_s15 }
   0x4   :  { %s207_s18 = scalar_lea.hbm %s350_s0, 256 }
   0x5   :  { %p208_p0 = scmp.ne.s32.totalorder %s350_s0, %s207_s18  ;;  %p211_p1 = scmp.lt.u32.totalorder %s207_s18, %s350_s0 }
   0x7   :  { %p213_p2 = pnand %p211_p1, %p208_p0 }
   0x9   :  { %216 = shalt.err (!%p213_p2)
}
   0xa   :  { %s217_s23 = scalar_lea.vmem %s18_s13, 256  ;;  %p222_p4 = scmp.lt.s32.totalorder %s18_s13, %s18_s13 }
   0xb   :  { %p218_p3 = scmp.ne.s32.totalorder %s18_s13, %s217_s23  ;;  %p223_p5 = scmp.lt.s32.totalorder %s217_s23, %s217_s23 }
   0xd   :  { %p224_p6 = por %p223_p5, %p222_p4 }
   0xf   :  { %p225_p7 = pnand %p224_p6, %p218_p3 }
  0x11   :  { %228 = shalt.err (!%p225_p7)
}
  0x12   :  { %20 = dma.hbm_to_vmem [thread:$0]  %s350_s0, 256, %s18_s13, [#allocation3]  }
  0x13   :  { %s229_s28 = scalar_lea.hbm %s351_s1, 4096 }
  0x14   :  { %p230_p8 = scmp.ne.s32.totalorder %s351_s1, %s229_s28  ;;  %p233_p9 = scmp.lt.u32.totalorder %s229_s28, %s351_s1 }
  0x16   :  { %p235_p10 = pnand %p233_p9, %p230_p8 }
  0x18   :  { %238 = shalt.err (!%p235_p10)
}
  0x19   :  { %s239_s6 = scalar_lea.vmem %s304_s15, 4096  ;;  %p244_p12 = scmp.lt.s32.totalorder %s304_s15, %s304_s15 }
  0x1a   :  { %p240_p11 = scmp.ne.s32.totalorder %s304_s15, %s239_s6  ;;  %p245_p13 = scmp.lt.s32.totalorder %s239_s6, %s239_s6 }
  0x1c   :  { %p246_p0 = por %p245_p13, %p244_p12 }
  0x1e   :  { %p247_p1 = pnand %p246_p0, %p240_p11 }
  0x20   :  { %250 = shalt.err (!%p247_p1)
}
  0x21   :  { %s281_s0 = smov 256   ;;  %s282_s7 = smov 16  }
  0x22   :  { %32 = dma.hbm_to_vmem [thread:$0]  %s351_s1, 4096, %s304_s15, [#allocation6], %s281_s0, %s281_s0, %s282_s7  }
  0x23   :  { %273 = dma.done.wait [#allocation3], 256  }
  0x24   :  { %274 = vsyncadd [#allocation3], 4294967040 }
  0x25   :  { %275 = dma.done.wait [#allocation6], 4096  }
  0x26   :  { %276 = vsyncadd [#allocation6], 4294963200  ;;  %v44_v0 = vld [vmem:[#allocation5 + $0x8] sm:$0xff]  ;;  %v46_v1 = vld [vmem:[#allocation5 + $0x18] sm:$0xff]  ;;  %s283_s11 = smov [#allocation7]  }
  0x27   :  { %v43_v2 = vld [vmem:[#allocation5] sm:$0xff]  ;;  %v170_v3 = vpack.c.bf16 %v46_v1, %v44_v0  ;;  %v45_v4 = vld [vmem:[#allocation5 + $0x10] sm:$0xff]  ;;  %v48_v5 = vld [vmem:[#allocation5 + $0x28] sm:$0xff]  ;;  %s159_s12 = sshll.u32 %s283_s11, 4  ;;  %s160_s12 = int_to_ptr.vmem [resolvable:$true] %s159_s12 }
  0x28   :  { %v50_v6 = vld [vmem:[#allocation5 + $0x38] sm:$0xff]  ;;  %v172_v7 = vpack.c.bf16 %v45_v4, %v43_v2  ;;  %v47_v9 = vld [vmem:[#allocation5 + $0x20] sm:$0xff]  ;;  %v49_v10 = vld [vmem:[#allocation5 + $0x30] sm:$0xff]  ;;  %s251_s13 = scalar_lea.vmem %s160_s12, 128  ;;  %p256_p3 = scmp.lt.s32.totalorder %s160_s12, %s160_s12 }
  0x29   :  { %v174_v8 = vpack.c.bf16 %v50_v6, %v48_v5  ;;  %171 = vmatprep.subr.bf16.mxu0 %v170_v3  ;;  %v52_v11 = vld [vmem:[#allocation5 + $0x48] sm:$0xff]  ;;  %v54_v12 = vld [vmem:[#allocation5 + $0x58] sm:$0xff]  ;;  %v176_v13 = vpack.c.bf16 %v49_v10, %v47_v9  ;;  %v51_v16 = vld [vmem:[#allocation5 + $0x40] sm:$0xff]  ;;  %p252_p2 = scmp.ne.s32.totalorder %s160_s12, %s251_s13  ;;  %p257_p4 = scmp.lt.s32.totalorder %s251_s13, %s251_s13 }
  0x2a   :  { %173 = vmatpush1.bf16.xpose.msra.mxu0 %v172_v7  ;;  %v178_v14 = vpack.c.bf16 %v54_v12, %v52_v11  ;;  %v42_v15 = vld [vmem:[#allocation2 + $0x8] sm:$0xff]  ;;  %v53_v17 = vld [vmem:[#allocation5 + $0x50] sm:$0xff]  ;;  %v56_v18 = vld [vmem:[#allocation5 + $0x68] sm:$0xff] }
  0x2b   :  { %175 = vmatprep.subr.bf16.mxu0 %v174_v8  ;;  %146 = vmatprep.mubr.f32.mxu0 %v42_v15  ;;  %v58_v19 = vld [vmem:[#allocation5 + $0x78] sm:$0xff]  ;;  %v180_v20 = vpack.c.bf16 %v53_v17, %v51_v16  ;;  %v55_v22 = vld [vmem:[#allocation5 + $0x60] sm:$0xff]  ;;  %v57_v23 = vld [vmem:[#allocation5 + $0x70] sm:$0xff]  ;;  %p258_p5 = por %p257_p4, %p256_p3 }
  0x2c   :  { %v182_v21 = vpack.c.bf16 %v58_v19, %v56_v18  ;;  %v60_v24 = vld [vmem:[#allocation5 + $0x88] sm:$0xff]  ;;  %v62_v25 = vld [vmem:[#allocation5 + $0x98] sm:$0xff]  ;;  %v184_v26 = vpack.c.bf16 %v57_v23, %v55_v22  ;;  %v59_v28 = vld [vmem:[#allocation5 + $0x80] sm:$0xff] }
  0x2d   :  { %v186_v27 = vpack.c.bf16 %v62_v25, %v60_v24  ;;  %v61_v29 = vld [vmem:[#allocation5 + $0x90] sm:$0xff]  ;;  %v64_v30 = vld [vmem:[#allocation5 + $0xa8] sm:$0xff]  ;;  %v66_v31 = vld [vmem:[#allocation5 + $0xb8] sm:$0xff]  ;;  %p259_p6 = pnand %p258_p5, %p252_p2 }
  0x2e   :  { %v188_v32 = vpack.c.bf16 %v61_v29, %v59_v28  ;;  %v190_v33 = vpack.c.bf16 %v66_v31, %v64_v30  ;;  %v63_v34 = vld [vmem:[#allocation5 + $0xa0] sm:$0xff]  ;;  %v65_v35 = vld [vmem:[#allocation5 + $0xb0] sm:$0xff]  ;;  %v68_v36 = vld [vmem:[#allocation5 + $0xc8] sm:$0xff] }
  0x2f   :  { %v70_v37 = vld [vmem:[#allocation5 + $0xd8] sm:$0xff]  ;;  %v192_v38 = vpack.c.bf16 %v65_v35, %v63_v34  ;;  %v67_v40 = vld [vmem:[#allocation5 + $0xc0] sm:$0xff]  ;;  %v69_v41 = vld [vmem:[#allocation5 + $0xd0] sm:$0xff] }
  0x30   :  { %v194_v39 = vpack.c.bf16 %v70_v37, %v68_v36  ;;  %v72_v42 = vld [vmem:[#allocation5 + $0xe8] sm:$0xff]  ;;  %v74_v43 = vld [vmem:[#allocation5 + $0xf8] sm:$0xff]  ;;  %v196_v44 = vpack.c.bf16 %v69_v41, %v67_v40  ;;  %v71_v46 = vld [vmem:[#allocation5 + $0xe0] sm:$0xff] }
  0x31   :  { %v198_v45 = vpack.c.bf16 %v74_v43, %v72_v42  ;;  %v73_v47 = vld [vmem:[#allocation5 + $0xf0] sm:$0xff] }
  0x32   :  { %177 = vmatpush1.bf16.xpose.msra.mxu0 %v176_v13  ;;  %v200_v48 = vpack.c.bf16 %v73_v47, %v71_v46  ;;  %v41_v49 = vld [vmem:[#allocation2] sm:$0xff] }
  0x33   :  { %179 = vmatprep.subr.bf16.mxu0 %v178_v14  ;;  %v169_v50 = vld [vmem:[%s352_s2] ss:$0 sm:$0xff] }
  0x3a   :  { %181 = vmatpush1.bf16.xpose.msra.mxu0 %v180_v20 }
  0x3b   :  { %183 = vmatprep.subr.bf16.mxu0 %v182_v21 }
  0x42   :  { %185 = vmatpush1.bf16.xpose.msra.mxu0 %v184_v26 }
  0x43   :  { %187 = vmatprep.subr.bf16.mxu0 %v186_v27 }
  0x4a   :  { %189 = vmatpush1.bf16.xpose.msra.mxu0 %v188_v32 }
  0x4b   :  { %191 = vmatprep.subr.bf16.mxu0 %v190_v33 }
  0x52   :  { %193 = vmatpush1.bf16.xpose.msra.mxu0 %v192_v38 }
  0x53   :  { %195 = vmatprep.subr.bf16.mxu0 %v194_v39 }
  0x5a   :  { %197 = vmatpush1.bf16.xpose.msra.mxu0 %v196_v44 }
  0x5b   :  { %199 = vmatprep.subr.bf16.mxu0 %v198_v45 }
  0x62   :  { %201 = vmatpush1.bf16.xpose.msra.mxu0 %v200_v48 }
  0x69   :  { %147 = vmatmul.mubr.f32.vlgmr.msra.gmra.mrb[0].mxu0 %v41_v49 }
 0x13c   :  { %v148_v51 = vpop.f32.mrb[0].mxu0 }
 0x13d   :  { %v149_v52 = vadd.f32 %v169_v50, %v148_v51  ;;  %v150_v53 = vpop.f32.mrb[1].mxu0 }
 0x13f   :  { %152 = vst [vmem:[#allocation7] sm:$0xff] %v149_v52 }
 0x140   :  { %262 = shalt.err (!%p259_p6)
}
 0x141   :  { %s263_s16 = scalar_lea.hbm %s353_s3, 128 }
 0x142   :  { %p264_p7 = scmp.ne.s32.totalorder %s353_s3, %s263_s16  ;;  %p267_p8 = scmp.lt.u32.totalorder %s263_s16, %s353_s3 }
 0x144   :  { %p269_p9 = pnand %p267_p8, %p264_p7 }
 0x146   :  { %272 = shalt.err (!%p269_p9)
}
 0x147   :  { %162 = dma.vmem_to_hbm [thread:$0]  %s160_s12, 128, %s353_s3, [#allocation4]  }
 0x148   :  { %277 = dma.done.wait [#allocation4], 128  }
 0x149   :  { %278 = vsyncadd [#allocation4], 4294967168 }
 0x14a   :  { %166 = vsyncpa [#allocation3], 1 }
 0x14b   :  { %167 = vsyncpa [#allocation6], 1 }
 0x14c   :  { %168 = vsyncpa [#allocation4], 1 }

</bundles_post_ra>
